<compile_context>
chip_gen: v7x
topology: tpu7x:2x2x1
jax: 0.10.0
libtpu: 0.0.40
codegen_flags: <defaults>
</compile_context>

<pallas_src>
import functools

import jax
import jax.numpy as jnp
from jax.experimental import pallas as pl
from jax.experimental.pallas import tpu as pltpu


def _label_smooth_kernel(x_ref, tgt_ref, prob_ref, out_ref,
                         m_ref, l_ref, sx_ref, xt_ref, *,
                         confidence, smoothing, n_rows, n_classes,
                         partial_c, use_mxu_sums):
    i = pl.program_id(0)                      # row-block index  ("parallel")
    k = pl.program_id(1)                      # class-block index ("arbitrary")
    tile_n, tile_c = x_ref.shape

    # --- init per-row online-softmax accumulators at the first class tile ---
    @pl.when(k == 0)
    def _():
        m_ref[...] = jnp.full(m_ref.shape, -jnp.inf, dtype=jnp.float32)
        l_ref[...] = jnp.zeros(l_ref.shape, dtype=jnp.float32)
        sx_ref[...] = jnp.zeros(sx_ref.shape, dtype=jnp.float32)
        xt_ref[...] = jnp.zeros(xt_ref.shape, dtype=jnp.float32)

    x = x_ref[...].astype(jnp.float32)                               # (tn, tc)

    # Class indices of this tile, built once at (1, tc) and broadcast.
    cols = k * tile_c + jax.lax.broadcasted_iota(jnp.int32, (1, tile_c), 1)

    if partial_c:                       # static: last class tile is ragged
        col_ok = cols < n_classes
        x_max_in = jnp.where(col_ok, x, -jnp.inf)
        x_sum_in = jnp.where(col_ok, x, 0.0)
    else:
        x_max_in = x
        x_sum_in = x

    # --- online max / exp-sum across class tiles ---
    m_prev = m_ref[...]
    m_new = jnp.maximum(m_prev, jnp.max(x_max_in, axis=-1, keepdims=True))
    e = jnp.exp(x_max_in - m_new)       # padded cols -> exp(-inf) = 0

    if use_mxu_sums:
        # Offload the two plain row sums to the idle MXU (XLU relief).
        ones = jnp.ones((tile_c, 1), jnp.float32)
        e_sum = jnp.dot(e, ones, preferred_element_type=jnp.float32)
        x_sum = jnp.dot(x_sum_in, ones, preferred_element_type=jnp.float32)
    else:
        e_sum = jnp.sum(e, axis=-1, keepdims=True)
        x_sum = jnp.sum(x_sum_in, axis=-1, keepdims=True)

    # Logit at the target class via masked lane reduction (no gather on TPU).
    x_t = jnp.sum(jnp.where(cols == tgt_ref[...], x, 0.0),
                  axis=-1, keepdims=True)

    l_ref[...] = jnp.exp(m_prev - m_new) * l_ref[...] + e_sum
    sx_ref[...] = sx_ref[...] + x_sum
    xt_ref[...] = xt_ref[...] + x_t
    m_ref[...] = m_new

    # --- finalize at the last class tile ---
    @pl.when(k == pl.num_programs(1) - 1)
    def _():
        lse = m_ref[...] + jnp.log(l_ref[...])                       # (tn, 1)
        nll_loss = lse - xt_ref[...]                 # = -logp[target]
        smooth_loss = lse - sx_ref[...] * (1.0 / n_classes)          # = -mean(logp)

        coef = (1.0 - prob_ref[...]) * smoothing     # per-sample smoothing
        loss = confidence * nll_loss + coef * smooth_loss            # (tn, 1)

        # Mask rows past the true batch size (partial last row block).
        row = i * tile_n + jax.lax.broadcasted_iota(jnp.int32, (tile_n, 1), 0)
        loss = jnp.where(row < n_rows, loss, 0.0)

        # Lane-dense, (8,128)-aligned partial-sum store (no masked vst).
        out_ref[...] = jnp.broadcast_to(jnp.sum(loss, keepdims=True), (8, 128))


def _vmem_budget():
    """(vmem_limit_bytes, block working-set budget) from the chip's VMEM."""
    try:
        cap = int(pltpu.get_tpu_info().vmem_capacity_bytes)
    except Exception:
        cap = 64 * 1024 * 1024            # assume the tightest generation (v7x)
    limit = (3 * cap) // 4                # 48 MiB on v7x, 96 MiB on v5e/v6e
    budget = limit - (8 << 20)            # headroom for outputs / misc
    return limit, budget


def _pick_tiles(n, c, in_itemsize, budget_bytes):
    # Bytes per (row, class) element resident while a block is processed:
    # 2x the input block (double-buffered DMA) + ~4 f32-sized temporaries
    # (upcast / masked copies / exp), independent of input dtype.
    per_elem = 2 * in_itemsize + 4 * 4
    # Per-row overhead: (tile_n, 1) target/prob blocks (x2 buffers) and the
    # four (tile_n, 1) f32 accumulators are lane-padded to 128 in VMEM.
    per_row = 8 * 128 * 4

    # Tile the class axis only when even an 8-row, full-C block would blow
    # the budget (very large vocabularies).  Class tiles must be x128.
    if 8 * (c * per_elem + per_row) <= budget_bytes:
        tile_c = c
    else:
        tile_c = ((budget_bytes // 8 - per_row) // per_elem) // 128 * 128
        tile_c = max(128, tile_c)

    # Rows: as many as the budget allows ...
    tile_n = max(8, (budget_bytes // (tile_c * per_elem + per_row)) // 8 * 8)
    # ... but keep >=2 (ideally >=8) row blocks whenever the batch allows so
    # the "parallel" axis gives both v7x TensorCores work.
    desired_blocks = min(8, max(1, n // 8))
    cap = ((-(-n // desired_blocks) + 7) // 8) * 8
    tile_n = max(8, min(tile_n, cap))
    return tile_n, tile_c


def sample_label_smoothing_loss(x, target, prob=None, *, smoothing=0.1,
                                tile_n=None, tile_c=None):
    """JAX/Pallas equivalent of SampleLabelSmoothing(smoothing)(x, target, prob)."""
    n, c = x.shape
    confidence = float(1.0 - smoothing)

    if prob is None:
        prob = jnp.zeros((n,), jnp.float32)
    tgt = target.astype(jnp.int32).reshape(n, 1)
    prb = prob.astype(jnp.float32).reshape(n, 1)

    vmem_limit, budget = _vmem_budget()
    auto_n, auto_c = _pick_tiles(n, c, jnp.dtype(x.dtype).itemsize, budget)
    if tile_n is None:
        tile_n = auto_n
    if tile_c is None:
        tile_c = auto_c

    num_i = pl.cdiv(n, tile_n)
    num_k = pl.cdiv(c, tile_c)

    kernel = functools.partial(
        _label_smooth_kernel,
        confidence=confidence, smoothing=float(smoothing),
        n_rows=n, n_classes=c,
        partial_c=(c % tile_c != 0),
        use_mxu_sums=(tile_c >= 128))

    partials = pl.pallas_call(
        kernel,
        out_shape=jax.ShapeDtypeStruct((num_i * 8, 128), jnp.float32),
        grid=(num_i, num_k),
        in_specs=[
            # logits tile
            pl.BlockSpec((tile_n, tile_c), lambda i, k: (i, k)),
            # targets / per-sample prob: index does not depend on k, so they
            # are DMA'd once per row block (grid-invariant along the class axis).
            pl.BlockSpec((tile_n, 1), lambda i, k: (i, 0)),
            pl.BlockSpec((tile_n, 1), lambda i, k: (i, 0)),
        ],
        out_specs=pl.BlockSpec((8, 128), lambda i, k: (i, 0)),
        scratch_shapes=[pltpu.VMEM((tile_n, 1), jnp.float32)] * 4,  # m, l, sum(x), x_t
        compiler_params=pltpu.CompilerParams(
            dimension_semantics=("parallel", "arbitrary"),
            vmem_limit_bytes=int(vmem_limit),
        ),
    )(x, tgt, prb)

    # Each row block wrote its partial replicated across an (8, 128) slab.
    return jnp.sum(partials[0::8, 0]) / jnp.float32(n)


def _reference(x, target, prob, smoothing=0.1):
    logprobs = jax.nn.log_softmax(x.astype(jnp.float32), axis=-1)
    nll = -jnp.take_along_axis(logprobs, target[:, None], axis=-1)[:, 0]
    smooth = -jnp.mean(logprobs, axis=-1)
    confidence = 1.0 - smoothing
    smooth_coef = (1.0 - prob) * smoothing
    return jnp.mean(confidence * nll + smooth_coef * smooth)


if __name__ == "__main__":
    key = jax.random.PRNGKey(0)
    k1, k2, k3 = jax.random.split(key, 3)
    smoothing = 0.1

    # --- small f32 case (single block, XLU sums) ---
    N, C = 8, 32
    x = jax.random.normal(k1, (N, C), dtype=jnp.float32)
    target = jax.random.randint(k2, (N,), 0, C, dtype=jnp.int32)
    prob = jax.random.uniform(k3, (N,), dtype=jnp.float32)
    loss = jax.block_until_ready(
        sample_label_smoothing_loss(x, target, prob, smoothing=smoothing))
    ref = _reference(x, target, prob, smoothing=smoothing)
    assert jnp.allclose(loss, ref, atol=2e-5, rtol=2e-5), (loss, ref)

    # --- row-tiled case with a partial last row block ---
    N2, C2 = 20, 40
    xb = jax.random.normal(k1, (N2, C2), dtype=jnp.float32)
    tb = jax.random.randint(k2, (N2,), 0, C2, dtype=jnp.int32)
    pb = jax.random.uniform(k3, (N2,), dtype=jnp.float32)
    loss2 = jax.block_until_ready(
        sample_label_smoothing_loss(xb, tb, pb, smoothing=smoothing, tile_n=8))
    ref2 = _reference(xb, tb, pb, smoothing=smoothing)
    assert jnp.allclose(loss2, ref2, atol=2e-5, rtol=2e-5), (loss2, ref2)

    # --- bf16 logits (narrow DMA, f32 math in-kernel, auto tiles) ---
    xh = xb.astype(jnp.bfloat16)
    loss3 = jax.block_until_ready(
        sample_label_smoothing_loss(xh, tb, pb, smoothing=smoothing))
    ref3 = _reference(xh.astype(jnp.float32), tb, pb, smoothing=smoothing)
    assert jnp.allclose(loss3, ref3, atol=1e-4, rtol=1e-4), (loss3, ref3)

    # --- class-tiled online-softmax path (ragged last class tile, ragged
    #     last row block, MXU row sums) ---
    N3, C3 = 22, 320
    xc = jax.random.normal(k1, (N3, C3), dtype=jnp.float32)
    tc = jax.random.randint(k2, (N3,), 0, C3, dtype=jnp.int32)
    pc = jax.random.uniform(k3, (N3,), dtype=jnp.float32)
    loss4 = jax.block_until_ready(
        sample_label_smoothing_loss(xc, tc, pc, smoothing=smoothing,
                                    tile_n=8, tile_c=128))
    ref4 = _reference(xc, tc, pc, smoothing=smoothing)
    assert jnp.allclose(loss4, ref4, atol=2e-5, rtol=2e-5), (loss4, ref4)

    print("KERNEL_OK")
</pallas_src>

<mosaic_0001>
module attributes {stable_mosaic.version = 11 : i64} {
  func.func @_label_smooth_kernel(%arg0: i32, %arg1: i32, %arg2: memref<8x32xf32, #tpu.memory_space<vmem>>, %arg3: memref<8x1xi32, #tpu.memory_space<vmem>>, %arg4: memref<8x1xf32, #tpu.memory_space<vmem>>, %arg5: memref<8x128xf32, #tpu.memory_space<vmem>>, %arg6: memref<8x1xf32, #tpu.memory_space<vmem>>, %arg7: memref<8x1xf32, #tpu.memory_space<vmem>>, %arg8: memref<8x1xf32, #tpu.memory_space<vmem>>, %arg9: memref<8x1xf32, #tpu.memory_space<vmem>>) attributes {dimension_semantics = [#tpu.dimension_semantics<parallel>, #tpu.dimension_semantics<arbitrary>], iteration_bounds = array<i64: 1, 1>, scalar_prefetch = 0 : i64, scratch_operands = 4 : i64, tpu.core_type = #tpu.core_type<tc>, window_params = [{transform_indices = @transform_0, window_bounds = array<i64: 8, 32>}, {transform_indices = @transform_1, window_bounds = array<i64: 8, 1>}, {transform_indices = @transform_2, window_bounds = array<i64: 8, 1>}, {transform_indices = @transform_3, window_bounds = array<i64: 8, 128>}]} {
    %c0_i32 = arith.constant 0 : i32
    %0 = arith.cmpi eq, %arg1, %c0_i32 : i32
    %1 = arith.extui %0 : i1 to i32
    %c0_i32_0 = arith.constant 0 : i32
    %2 = arith.cmpi ne, %1, %c0_i32_0 : i32
    scf.if %2 {
      %cst_26 = arith.constant 0xFF800000 : f32
      %43 = vector.broadcast %cst_26 : f32 to vector<8x1xf32>
      %c0_27 = arith.constant 0 : index
      %c0_28 = arith.constant 0 : index
      %44 = vector.load %arg6[%c0_27, %c0_28] : memref<8x1xf32, #tpu.memory_space<vmem>>, vector<8x1xf32>
      tpu.vector_store %arg6[%c0_27, %c0_28], %43 {strides = array<i32>} : memref<8x1xf32, #tpu.memory_space<vmem>>, vector<8x1xf32>,
      %cst_29 = arith.constant 0.000000e+00 : f32
      %45 = vector.broadcast %cst_29 : f32 to vector<8x1xf32>
      %c0_30 = arith.constant 0 : index
      %c0_31 = arith.constant 0 : index
      %46 = vector.load %arg7[%c0_30, %c0_31] : memref<8x1xf32, #tpu.memory_space<vmem>>, vector<8x1xf32>
      tpu.vector_store %arg7[%c0_30, %c0_31], %45 {strides = array<i32>} : memref<8x1xf32, #tpu.memory_space<vmem>>, vector<8x1xf32>,
      %cst_32 = arith.constant 0.000000e+00 : f32
      %47 = vector.broadcast %cst_32 : f32 to vector<8x1xf32>
      %c0_33 = arith.constant 0 : index
      %c0_34 = arith.constant 0 : index
      %48 = vector.load %arg8[%c0_33, %c0_34] : memref<8x1xf32, #tpu.memory_space<vmem>>, vector<8x1xf32>
      tpu.vector_store %arg8[%c0_33, %c0_34], %47 {strides = array<i32>} : memref<8x1xf32, #tpu.memory_space<vmem>>, vector<8x1xf32>,
      %cst_35 = arith.constant 0.000000e+00 : f32
      %49 = vector.broadcast %cst_35 : f32 to vector<8x1xf32>
      %c0_36 = arith.constant 0 : index
      %c0_37 = arith.constant 0 : index
      %50 = vector.load %arg9[%c0_36, %c0_37] : memref<8x1xf32, #tpu.memory_space<vmem>>, vector<8x1xf32>
      tpu.vector_store %arg9[%c0_36, %c0_37], %49 {strides = array<i32>} : memref<8x1xf32, #tpu.memory_space<vmem>>, vector<8x1xf32>,
    } else {
    }
    %c0 = arith.constant 0 : index
    %c0_1 = arith.constant 0 : index
    %3 = vector.load %arg2[%c0, %c0_1] : memref<8x32xf32, #tpu.memory_space<vmem>>, vector<8x32xf32>
    %c32_i32 = arith.constant 32 : i32
    %4 = arith.muli %arg1, %c32_i32 : i32
    %5 = tpu.iota {dimensions = array<i32: 1>} : vector<1x32xi32>
    %6 = vector.broadcast %4 : i32 to vector<1x32xi32>
    %7 = arith.addi %6, %5 : vector<1x32xi32>
    %c0_2 = arith.constant 0 : index
    %c0_3 = arith.constant 0 : index
    %8 = vector.load %arg6[%c0_2, %c0_3] : memref<8x1xf32, #tpu.memory_space<vmem>>, vector<8x1xf32>
    %cst = arith.constant dense<0xFF800000> : vector<8xf32>
    %9 = vector.multi_reduction <maximumf>, %3, %cst [1] : vector<8x32xf32> to vector<8xf32>
    %10 = vector.shape_cast %9 : vector<8xf32> to vector<8x1xf32>
    %11 = arith.maximumf %8, %10 : vector<8x1xf32>
    %12 = vector.broadcast %11 : vector<8x1xf32> to vector<8x32xf32>
    %13 = arith.subf %3, %12 : vector<8x32xf32>
    %14 = math.exp %13 : vector<8x32xf32>
    %cst_4 = arith.constant dense<0.000000e+00> : vector<8xf32>
    %15 = vector.multi_reduction <add>, %14, %cst_4 [1] : vector<8x32xf32> to vector<8xf32>
    %16 = vector.shape_cast %15 : vector<8xf32> to vector<8x1xf32>
    %cst_5 = arith.constant dense<0.000000e+00> : vector<8xf32>
    %17 = vector.multi_reduction <add>, %3, %cst_5 [1] : vector<8x32xf32> to vector<8xf32>
    %18 = vector.shape_cast %17 : vector<8xf32> to vector<8x1xf32>
    %c0_6 = arith.constant 0 : index
    %c0_7 = arith.constant 0 : index
    %19 = vector.load %arg3[%c0_6, %c0_7] : memref<8x1xi32, #tpu.memory_space<vmem>>, vector<8x1xi32>
    %20 = vector.broadcast %7 : vector<1x32xi32> to vector<8x32xi32>
    %21 = vector.broadcast %19 : vector<8x1xi32> to vector<8x32xi32>
    %22 = arith.cmpi eq, %20, %21 : vector<8x32xi32>
    %cst_8 = arith.constant 0.000000e+00 : f32
    %23 = vector.broadcast %cst_8 : f32 to vector<8x32xf32>
    %24 = arith.select %22, %3, %23 : vector<8x32xi1>, vector<8x32xf32>
    %cst_9 = arith.constant dense<0.000000e+00> : vector<8xf32>
    %25 = vector.multi_reduction <add>, %24, %cst_9 [1] : vector<8x32xf32> to vector<8xf32>
    %26 = vector.shape_cast %25 : vector<8xf32> to vector<8x1xf32>
    %27 = arith.subf %8, %11 : vector<8x1xf32>
    %28 = math.exp %27 : vector<8x1xf32>
    %c0_10 = arith.constant 0 : index
    %c0_11 = arith.constant 0 : index
    %29 = vector.load %arg7[%c0_10, %c0_11] : memref<8x1xf32, #tpu.memory_space<vmem>>, vector<8x1xf32>
    %30 = arith.mulf %28, %29 : vector<8x1xf32>
    %31 = arith.addf %30, %16 : vector<8x1xf32>
    %c0_12 = arith.constant 0 : index
    %c0_13 = arith.constant 0 : index
    %32 = vector.load %arg7[%c0_12, %c0_13] : memref<8x1xf32, #tpu.memory_space<vmem>>, vector<8x1xf32>
    tpu.vector_store %arg7[%c0_12, %c0_13], %31 {strides = array<i32>} : memref<8x1xf32, #tpu.memory_space<vmem>>, vector<8x1xf32>,
    %c0_14 = arith.constant 0 : index
    %c0_15 = arith.constant 0 : index
    %33 = vector.load %arg8[%c0_14, %c0_15] : memref<8x1xf32, #tpu.memory_space<vmem>>, vector<8x1xf32>
    %34 = arith.addf %33, %18 : vector<8x1xf32>
    %c0_16 = arith.constant 0 : index
    %c0_17 = arith.constant 0 : index
    %35 = vector.load %arg8[%c0_16, %c0_17] : memref<8x1xf32, #tpu.memory_space<vmem>>, vector<8x1xf32>
    tpu.vector_store %arg8[%c0_16, %c0_17], %34 {strides = array<i32>} : memref<8x1xf32, #tpu.memory_space<vmem>>, vector<8x1xf32>,
    %c0_18 = arith.constant 0 : index
    %c0_19 = arith.constant 0 : index
    %36 = vector.load %arg9[%c0_18, %c0_19] : memref<8x1xf32, #tpu.memory_space<vmem>>, vector<8x1xf32>
    %37 = arith.addf %36, %26 : vector<8x1xf32>
    %c0_20 = arith.constant 0 : index
    %c0_21 = arith.constant 0 : index
    %38 = vector.load %arg9[%c0_20, %c0_21] : memref<8x1xf32, #tpu.memory_space<vmem>>, vector<8x1xf32>
    tpu.vector_store %arg9[%c0_20, %c0_21], %37 {strides = array<i32>} : memref<8x1xf32, #tpu.memory_space<vmem>>, vector<8x1xf32>,
    %c0_22 = arith.constant 0 : index
    %c0_23 = arith.constant 0 : index
    %39 = vector.load %arg6[%c0_22, %c0_23] : memref<8x1xf32, #tpu.memory_space<vmem>>, vector<8x1xf32>
    tpu.vector_store %arg6[%c0_22, %c0_23], %11 {strides = array<i32>} : memref<8x1xf32, #tpu.memory_space<vmem>>, vector<8x1xf32>,
    %c0_i32_24 = arith.constant 0 : i32
    %40 = arith.cmpi eq, %arg1, %c0_i32_24 : i32
    %41 = arith.extui %40 : i1 to i32
    %c0_i32_25 = arith.constant 0 : i32
    %42 = arith.cmpi ne, %41, %c0_i32_25 : i32
    scf.if %42 {
      %c0_26 = arith.constant 0 : index
      %c0_27 = arith.constant 0 : index
      %43 = vector.load %arg6[%c0_26, %c0_27] : memref<8x1xf32, #tpu.memory_space<vmem>>, vector<8x1xf32>
      %c0_28 = arith.constant 0 : index
      %c0_29 = arith.constant 0 : index
      %44 = vector.load %arg7[%c0_28, %c0_29] : memref<8x1xf32, #tpu.memory_space<vmem>>, vector<8x1xf32>
      %45 = math.log %44 : vector<8x1xf32>
      %46 = arith.addf %43, %45 : vector<8x1xf32>
      %c0_30 = arith.constant 0 : index
      %c0_31 = arith.constant 0 : index
      %47 = vector.load %arg9[%c0_30, %c0_31] : memref<8x1xf32, #tpu.memory_space<vmem>>, vector<8x1xf32>
      %48 = arith.subf %46, %47 : vector<8x1xf32>
      %c0_32 = arith.constant 0 : index
      %c0_33 = arith.constant 0 : index
      %49 = vector.load %arg8[%c0_32, %c0_33] : memref<8x1xf32, #tpu.memory_space<vmem>>, vector<8x1xf32>
      %cst_34 = arith.constant 3.125000e-02 : f32
      %50 = vector.broadcast %cst_34 : f32 to vector<8x1xf32>
      %51 = arith.mulf %49, %50 : vector<8x1xf32>
      %52 = arith.subf %46, %51 : vector<8x1xf32>
      %c0_35 = arith.constant 0 : index
      %c0_36 = arith.constant 0 : index
      %53 = vector.load %arg4[%c0_35, %c0_36] : memref<8x1xf32, #tpu.memory_space<vmem>>, vector<8x1xf32>
      %cst_37 = arith.constant 1.000000e+00 : f32
      %54 = vector.broadcast %cst_37 : f32 to vector<8x1xf32>
      %55 = arith.subf %54, %53 : vector<8x1xf32>
      %cst_38 = arith.constant 1.000000e-01 : f32
      %56 = vector.broadcast %cst_38 : f32 to vector<8x1xf32>
      %57 = arith.mulf %55, %56 : vector<8x1xf32>
      %cst_39 = arith.constant 0.899999976 : f32
      %58 = vector.broadcast %cst_39 : f32 to vector<8x1xf32>
      %59 = arith.mulf %58, %48 : vector<8x1xf32>
      %60 = arith.mulf %57, %52 : vector<8x1xf32>
      %61 = arith.addf %59, %60 : vector<8x1xf32>
      %c8_i32 = arith.constant 8 : i32
      %62 = arith.muli %arg0, %c8_i32 : i32
      %63 = tpu.iota {dimensions = array<i32: 0>} : vector<8x1xi32>
      %64 = vector.broadcast %62 : i32 to vector<8x1xi32>
      %65 = arith.addi %64, %63 : vector<8x1xi32>
      %c8_i32_40 = arith.constant 8 : i32
      %66 = vector.broadcast %c8_i32_40 : i32 to vector<8x1xi32>
      %67 = arith.cmpi slt, %65, %66 : vector<8x1xi32>
      %cst_41 = arith.constant 0.000000e+00 : f32
      %68 = vector.broadcast %cst_41 : f32 to vector<8x1xf32>
      %69 = arith.select %67, %61, %68 : vector<8x1xi1>, vector<8x1xf32>
      %70 = vector.shape_cast %69 : vector<8x1xf32> to vector<1x8x1xf32>
      %cst_42 = arith.constant dense<0.000000e+00> : vector<1xf32>
      %71 = vector.multi_reduction <add>, %70, %cst_42 [1, 2] : vector<1x8x1xf32> to vector<1xf32>
      %72 = vector.shape_cast %71 : vector<1xf32> to vector<1x1x1xf32>
      %73 = vector.extract %72[0, 0, 0] : f32 from vector<1x1x1xf32>
      %74 = vector.broadcast %73 : f32 to vector<1x1xf32>
      %75 = vector.shape_cast %74 : vector<1x1xf32> to vector<1x1xf32>
      %76 = vector.broadcast %75 : vector<1x1xf32> to vector<8x128xf32>
      %c0_43 = arith.constant 0 : index
      %c0_44 = arith.constant 0 : index
      %77 = vector.load %arg5[%c0_43, %c0_44] : memref<8x128xf32, #tpu.memory_space<vmem>>, vector<8x128xf32>
      tpu.vector_store %arg5[%c0_43, %c0_44], %76 {strides = array<i32>} : memref<8x128xf32, #tpu.memory_space<vmem>>, vector<8x128xf32>,
    } else {
    }
    return
  }
  func.func @transform_0(%arg0: i32, %arg1: i32) -> (i32, i32) {
    %c0_i32 = arith.constant 0 : i32
    return %arg0, %arg1 : i32, i32
  }
  func.func @transform_1(%arg0: i32, %arg1: i32) -> (i32, i32) {
    %c0_i32 = arith.constant 0 : i32
    %c0_i32_0 = arith.constant 0 : i32
    return %arg0, %c0_i32 : i32, i32
  }
  func.func @transform_2(%arg0: i32, %arg1: i32) -> (i32, i32) {
    %c0_i32 = arith.constant 0 : i32
    %c0_i32_0 = arith.constant 0 : i32
    return %arg0, %c0_i32 : i32, i32
  }
  func.func @transform_3(%arg0: i32, %arg1: i32) -> (i32, i32) {
    %c0_i32 = arith.constant 0 : i32
    %c0_i32_0 = arith.constant 0 : i32
    return %arg0, %c0_i32 : i32, i32
  }
}

</mosaic_0001>

<bundles_post_ra>
// kernel: tpu_custom_call.1
= control target key start
LH: loop header
LB: loop body
LE: loop exit
PB: predicated region body
PF: predicated region fallthrough
CT: control target
= control target key end

     0   :  { %vm31_vm0 = vcmask 261120   ;;  %s222_s0 = inlined_call_operand.vmem [shape: f32[8,32], index: 0, kind: input, shape index: {}]   ;;  %s223_s1 = inlined_call_operand.vmem [shape: s32[8,1], index: 1, kind: input, shape index: {}]   ;;  %s224_s2 = inlined_call_operand.vmem [shape: f32[8,1], index: 2, kind: input, shape index: {}]   ;;  %s225_s3 = inlined_call_operand.hbm [shape: f32[8,128], index: 3, kind: output, shape index: {}]  }
   0x1   :  { %v24_v0 = vld [vmem:[%s222_s0] sm:$0xff] }
   0x2   :  { %8 = vsyncpa [#allocation7], 0  ;;  %v32_v1 = vsel %vm31_vm0, %v24_v0, -inf  ;;  %vm19_vm1 = vcmask 7168   ;;  %v164_v2 = vmov -inf   ;;  %v165_v3 = vmov 0  }
   0x3   :  { %33 = vmax.xlane.f32.xlu0 %v32_v1  ;;  %20 = vst.msk [vmem:[#allocation2] sm:$0xff] %vm19_vm1, %v164_v2  ;;  %133 = vset.pattern.permute.xlu1 %v165_v3  ;;  %v50_v4 = vld [vmem:[%s223_s1] sm:$0xff]  ;;  %v166_v5 = vmov 0.0   ;;  %v26_v13 = vlaneseq  ;;  %v47_v18 = vsel %vm31_vm0, %v24_v0, 0.0 }
   0x4   :  { %132 = vset.pattern.permute.xlu0 %v165_v3  ;;  %52 = vperm.xlu1 %133, %v50_v4   ;;  %21 = vst.msk [vmem:[#allocation3] sm:$0xff] %vm19_vm1, %v166_v5  ;;  %22 = vst.msk [vmem:[#allocation4] sm:$0xff] %vm19_vm1, %v166_v5  ;;  %v87_v34 = vld [vmem:[%s224_s2] sm:$0xff]  ;;  %s167_s2 = smov [#allocation6]  }
   0x5   :  { %23 = vst.msk [vmem:[#allocation5] sm:$0xff] %vm19_vm1, %v166_v5  ;;  %v27_v14 = vand.u32 127, %v26_v13  ;;  %v88_v35 = vsub.f32 1.0, %v87_v34  ;;  %s118_s16 = sshll.u32 %s167_s2, 4  ;;  %s119_s16 = int_to_ptr.vmem [resolvable:$true] %s118_s16 }
   0x6   :  { %s140_s18 = scalar_lea.vmem %s119_s16, 128  ;;  %p145_p1 = scmp.lt.s32.totalorder %s119_s16, %s119_s16 }
   0x7   :  { %v89_v43 = vmul.f32 0.1, %v88_v35  ;;  %p141_p0 = scmp.ne.s32.totalorder %s119_s16, %s140_s18  ;;  %p146_p2 = scmp.lt.s32.totalorder %s140_s18, %s140_s18 }
   0x9   :  { %p147_p3 = por %p146_p2, %p145_p1 }
   0xa   :  { %v30_v6 = vld [vmem:[#allocation2] sm:$0xff] }
   0xb   :  { %v62_v23 = vld [vmem:[#allocation3] sm:$0xff]  ;;  %v67_v27 = vld [vmem:[#allocation4] sm:$0xff]  ;;  %p148_p4 = pnand %p147_p3, %p141_p0 }
   0xc   :  { %v70_v30 = vld [vmem:[#allocation5] sm:$0xff] }
  0x83   :  { %v53_v15 = vpop.permute.xlu1 %52 }
  0x84   :  { %vm54_vm2 = vcmp.eq.s32.totalorder %v27_v14, %v53_v15 }
  0x85   :  { %v55_v19 = vsel %vm54_vm2, %v24_v0, 0.0 }
  0x86   :  { %v56_v20 = vsel %vm31_vm0, %v55_v19, 0.0 }
  0x90   :  { %v34_v7 = vpop.xlane.xlu0 %33 }
  0x91   :  { %v35_v8 = vmax.f32 %v30_v6, %v34_v7 }
  0x93   :  { %v59_v9 = vsub.f32 %v30_v6, %v35_v8  ;;  %73 = vst.msk [vmem:[#allocation2] sm:$0xff] %vm19_vm1, %v35_v8  ;;  %38 = vperm.xlu0 %132, %v35_v8  }
  0x95   :  { %v60_v21 = vmul.f32 1.442695, %v59_v9 }
  0x9a   :  { %v77_v39 = vld [vmem:[#allocation2] sm:$0xff] }
 0x112   :  { %v39_v10 = vpop.permute.xlu0 %38 }
 0x113   :  { %v41_v11 = vsub.f32 %v24_v0, %v39_v10 }
 0x115   :  { %v42_v12 = vmul.f32 1.442695, %v41_v11 }
 0x117   :  { %134 = vpow2.f32 %v42_v12 }
 0x118   :  { %136 = vpow2.f32 %v60_v21 }
 0x121   :  { %v135_v16 = vpop.eup %134 }
 0x122   :  { %v44_v17 = vsel %vm31_vm0, %v135_v16, 0.0  ;;  %v137_v22 = vpop.eup %136 }
 0x123   :  { %45 = vadd.xlane.f32.xlu1 %v44_v17  ;;  %v63_v24 = vmul.f32 %v137_v22, %v62_v23 }
 0x127   :  { %48 = vadd.xlane.f32.xlu1 %v47_v18 }
 0x12b   :  { %57 = vadd.xlane.f32.xlu1 %v56_v20 }
 0x1b0   :  { %v46_v25 = vpop.xlane.xlu1 %45 }
 0x1b1   :  { %v64_v26 = vadd.f32 %v63_v24, %v46_v25 }
 0x1b3   :  { %66 = vst.msk [vmem:[#allocation3] sm:$0xff] %vm19_vm1, %v64_v26 }
 0x1b4   :  { %v49_v28 = vpop.xlane.xlu1 %48 }
 0x1b5   :  { %v68_v29 = vadd.f32 %v67_v27, %v49_v28 }
 0x1b7   :  { %69 = vst.msk [vmem:[#allocation4] sm:$0xff] %vm19_vm1, %v68_v29 }
 0x1b8   :  { %v58_v31 = vpop.xlane.xlu1 %57 }
 0x1b9   :  { %v71_v32 = vadd.f32 %v70_v30, %v58_v31 }
 0x1ba   :  { %v78_v33 = vld [vmem:[#allocation3] sm:$0xff] }
 0x1bb   :  { %72 = vst.msk [vmem:[#allocation5] sm:$0xff] %vm19_vm1, %v71_v32  ;;  %138 = vlog2.f32 %v78_v33 }
 0x1be   :  { %v84_v37 = vld [vmem:[#allocation4] sm:$0xff] }
 0x1bf   :  { %v85_v42 = vmul.f32 0.03125, %v84_v37 }
 0x1c2   :  { %v82_v40 = vld [vmem:[#allocation5] sm:$0xff] }
 0x1c5   :  { %v139_v36 = vpop.eup %138 }
 0x1c6   :  { %v80_v38 = vmul.f32 0.6931472, %v139_v36 }
 0x1c8   :  { %v81_v41 = vadd.f32 %v80_v38, %v77_v39 }
 0x1ca   :  { %v83_v44 = vsub.f32 %v81_v41, %v82_v40  ;;  %v86_v45 = vsub.f32 %v81_v41, %v85_v42 }
 0x1cc   :  { %v90_v46 = vmul.f32 0.9, %v83_v44  ;;  %v91_v47 = vmul.f32 %v89_v43, %v86_v45 }
 0x1ce   :  { %v92_v48 = vadd.f32 %v91_v47, %v90_v46 }
 0x1d0   :  { %v100_v49 = vsel %vm19_vm1, %v92_v48, 0.0 }
 0x1d1   :  { %101 = vadd.xlane.f32.xlu0 %v100_v49 }
 0x25e   :  { %v102_v50 = vpop.xlane.xlu0 %101 }
 0x25f   :  { %v103_v51 = vrot.slane %v102_v50, 4 }
 0x261   :  { %v104_v52 = vadd.f32 %v103_v51, %v102_v50 }
 0x263   :  { %v105_v53 = vrot.slane %v104_v52, 2 }
 0x265   :  { %v106_v54 = vadd.f32 %v105_v53, %v104_v52 }
 0x267   :  { %v107_v55 = vrot.slane %v106_v54, 1 }
 0x269   :  { %v108_v56 = vadd.f32 %v107_v55, %v106_v54 }
 0x26b   :  { %126 = vpush %v108_v56 }
 0x29c   :  { %s127_s17 = spop %126 }
 0x29d   :  { %v110_v57 = vstv %s127_s17 }
 0x29e   :  { %111 = vst [vmem:[#allocation6] sm:$0xff] %v110_v57 }
 0x29f   :  { %151 = shalt.err (!%p148_p4)
}
 0x2a0   :  { %s152_s21 = scalar_lea.hbm %s225_s3, 128 }
 0x2a1   :  { %p153_p5 = scmp.ne.s32.totalorder %s225_s3, %s152_s21  ;;  %p156_p6 = scmp.lt.u32.totalorder %s152_s21, %s225_s3 }
 0x2a3   :  { %p158_p7 = pnand %p156_p6, %p153_p5 }
 0x2a5   :  { %161 = shalt.err (!%p158_p7)
}
 0x2a6   :  { %121 = dma.vmem_to_hbm [thread:$0]  %s119_s16, 128, %s225_s3, [#allocation7]  }
 0x2a7   :  { %162 = dma.done.wait [#allocation7], 128  }
 0x2a8   :  { %163 = vsyncadd [#allocation7], 4294967168 }
 0x2a9   :  { %125 = vsyncpa [#allocation7], 1 }

</bundles_post_ra>
